<compile_context>
chip_gen: v6e
topology: v6e:2x2x1
jax: 0.10.0
libtpu: 0.0.40
codegen_flags: <defaults>
</compile_context>

<pallas_src>
import functools

import jax
import jax.numpy as jnp
from jax.experimental import pallas as pl
from jax.experimental.pallas import tpu as pltpu

LANE = 128        # lane-dense channel padding target
TILE_MAX = 512    # A-tile edge for the tiled path (512x512 bf16 = 512 KB, 1 MB double-buffered)


def _vmem_limit_bytes():
    """Per-generation scoped-VMEM budget (v5e/v6e: 128 MiB phys, v7x: 64 MiB)."""
    try:
        cap = int(pltpu.get_tpu_info().vmem_capacity_bytes)
    except Exception:
        cap = 64 * 1024 * 1024  # conservative (v7x-sized) fallback
    return max(32 * 1024 * 1024, min((cap * 3) // 4, 100 * 1024 * 1024))


# ---------------------------------------------------------------------------
# Kernels
# ---------------------------------------------------------------------------
def _sage_small_kernel(a_ref, x_ref, wl_ref, wr_ref, t_ref, out_ref, h_scr):
    """Fast path: whole padded graph resident in VMEM, grid = (num_layers,)."""
    l = pl.program_id(0)
    nl = pl.num_programs(0)

    @pl.when(l == 0)
    def _():
        h_scr[...] = x_ref[...]               # prime resident activations with x

    h = h_scr[...]                            # (n_pad, c_pad) bf16
    agg = jnp.dot(a_ref[...], h, preferred_element_type=jnp.float32)
    o = (jnp.dot(agg.astype(jnp.bfloat16), wl_ref[0],
                 preferred_element_type=jnp.float32)
         + jnp.dot(h, wr_ref[0], preferred_element_type=jnp.float32)
         + t_ref[0, 0:1, :])
    # ReLU on all but the last layer (BN already folded); eval dropout = identity.
    o = jnp.where(l == nl - 1, o, jnp.maximum(o, 0.0))
    h_scr[...] = o.astype(jnp.bfloat16)
    out_ref[...] = o                          # block index pinned -> one writeback


def _sage_tiled_kernel(a_ref, xk_ref, wl_ref, wr_ref, t_ref, out_ref,
                       acc_ref, h_scr, *, n_pad, tile):
    """Tiled path: grid = (layer, row_tile, neighbor_tile), reduction axis last."""
    l = pl.program_id(0)
    i = pl.program_id(1)
    k = pl.program_id(2)
    num_layers = pl.num_programs(0)
    nk = pl.num_programs(2)

    prev_buf = (l + 1) % 2                    # holds layer l-1 activations (or primed x)
    cur_buf = l % 2

    # Prime the resident activation buffer with x exactly once: layer 0, row-tile 0,
    # whose k-sweep walks all n_pad input rows.  Elsewhere the x BlockSpec index is
    # pinned, so no redundant HBM re-streaming happens.
    @pl.when((l == 0) & (i == 0))
    def _():
        off = pl.multiple_of(prev_buf * n_pad + k * tile, 128)
        h_scr[pl.ds(off, tile), :] = xk_ref[...]

    @pl.when(k == 0)
    def _():
        acc_ref[...] = jnp.zeros_like(acc_ref)

    # Mean-aggregation partial product (bf16 MXU, f32 accumulate); neighbor rows
    # always come from VMEM-resident activations.
    k_off = pl.multiple_of(prev_buf * n_pad + k * tile, 128)
    src = h_scr[pl.ds(k_off, tile), :]                        # (tile, c_pad) bf16
    acc_ref[...] += jnp.dot(a_ref[...], src, preferred_element_type=jnp.float32)

    @pl.when(k == nk - 1)
    def _():
        i_off = pl.multiple_of(prev_buf * n_pad + i * tile, 128)
        h_in = h_scr[pl.ds(i_off, tile), :]                   # (tile, c_pad) bf16
        # Split SAGEConv epilogue: two MXU matmuls summed in f32 (no concat temp);
        # BN scale/shift and bias already folded into Wl/Wr/t in the wrapper.
        h = (jnp.dot(acc_ref[...].astype(jnp.bfloat16), wl_ref[0],
                     preferred_element_type=jnp.float32)
             + jnp.dot(h_in, wr_ref[0], preferred_element_type=jnp.float32)
             + t_ref[0, 0:1, :])
        h = jnp.where(l == num_layers - 1, h, jnp.maximum(h, 0.0))
        out_ref[...] = h
        # Keep the activation resident for the next layer (bf16 ping-pong).
        cur_off = pl.multiple_of(cur_buf * n_pad + i * tile, 128)
        h_scr[pl.ds(cur_off, tile), :] = h.astype(jnp.bfloat16)


# ---------------------------------------------------------------------------
# Parameter folding / padding
# ---------------------------------------------------------------------------
def _fold_bn_into_layer(p, is_last, eps=1e-5):
    """Fold eval-mode BatchNorm (and keep the conv bias) into the layer weights."""
    wl, wr, bl = p["wl"], p["wr"], p["bl"]
    if is_last:
        return wl, wr, bl
    s = p["gamma"] * jax.lax.rsqrt(p["var"] + eps)            # [1, c_out]
    return wl * s, wr * s, (bl - p["mean"]) * s + p["beta"]


def _fold_and_pad_params(params, c_pad):
    """Per layer: fold BN/bias, zero-pad channels to c_pad lanes, stack over layers."""
    num_layers = len(params)
    wls, wrs, ts = [], [], []
    for li, p in enumerate(params):
        wl, wr, t = _fold_bn_into_layer(p, li == num_layers - 1)
        c_in, c_out = wl.shape
        wls.append(jnp.zeros((c_pad, c_pad), jnp.float32).at[:c_in, :c_out].set(wl))
        wrs.append(jnp.zeros((c_pad, c_pad), jnp.float32).at[:c_in, :c_out].set(wr))
        ts.append(jnp.zeros((8, c_pad), jnp.float32).at[:, :c_out].set(
            jnp.broadcast_to(t, (8, c_out))))
    return (jnp.stack(wls).astype(jnp.bfloat16),   # [L, c_pad, c_pad]
            jnp.stack(wrs).astype(jnp.bfloat16),   # [L, c_pad, c_pad]
            jnp.stack(ts))                         # [L, 8, c_pad] f32


def _pad_inputs(x, a_norm, n_pad, c_pad):
    n, c = x.shape
    x_p = jnp.zeros((n_pad, c_pad), jnp.bfloat16).at[:n, :c].set(x.astype(jnp.bfloat16))
    a_p = jnp.zeros((n_pad, n_pad), jnp.bfloat16).at[:n, :n].set(a_norm.astype(jnp.bfloat16))
    return x_p, a_p


# ---------------------------------------------------------------------------
# Wrappers
# ---------------------------------------------------------------------------
def _sage_forward_small(params, x, a_norm, n_pad, c_pad, vmem_budget):
    num_layers = len(params)
    wl_all, wr_all, t_all = _fold_and_pad_params(params, c_pad)
    x_p, a_p = _pad_inputs(x, a_norm, n_pad, c_pad)
    return pl.pallas_call(
        _sage_small_kernel,
        out_shape=jax.ShapeDtypeStruct((n_pad, c_pad), jnp.float32),
        grid_spec=pltpu.PrefetchScalarGridSpec(
            num_scalar_prefetch=0,
            grid=(num_layers,),
            in_specs=[
                pl.BlockSpec((n_pad, n_pad), lambda l: (0, 0)),            # A (pinned)
                pl.BlockSpec((n_pad, c_pad), lambda l: (0, 0)),            # x (pinned)
                pl.BlockSpec((1, c_pad, c_pad), lambda l: (l, 0, 0)),      # Wl (folded)
                pl.BlockSpec((1, c_pad, c_pad), lambda l: (l, 0, 0)),      # Wr (folded)
                pl.BlockSpec((1, 8, c_pad), lambda l: (l, 0, 0)),          # bias/shift
            ],
            out_specs=pl.BlockSpec((n_pad, c_pad), lambda l: (0, 0)),
            scratch_shapes=[pltpu.VMEM((n_pad, c_pad), jnp.bfloat16)],     # resident h
        ),
        compiler_params=pltpu.CompilerParams(
            dimension_semantics=("arbitrary",),
            vmem_limit_bytes=vmem_budget,
        ),
    )(a_p, x_p, wl_all, wr_all, t_all)


def _sage_forward_tiled(params, x, a_norm, c_pad, vmem_budget):
    num_layers = len(params)
    n = x.shape[0]
    tile = min(TILE_MAX, 128 * pl.cdiv(n, 128))
    n_pad = tile * pl.cdiv(n, tile)

    # Budget the N-scaled resident-activation scratch against per-core VMEM.
    h_scr_bytes = 2 * n_pad * c_pad * 2
    tile_bytes = (2 * tile * tile * 2 + 2 * tile * c_pad * 2
                  + 2 * tile * c_pad * 4 + tile * c_pad * 4)
    if h_scr_bytes + tile_bytes > (vmem_budget * 9) // 10:
        # TODO(synk): per-layer pallas_call fallback (h round-trips HBM) for graphs
        # whose fused activation scratch exceeds VMEM (notably v7x's 64 MiB).
        raise NotImplementedError("graph too large for the fused resident-activation path")

    wl_all, wr_all, t_all = _fold_and_pad_params(params, c_pad)
    x_p, a_p = _pad_inputs(x, a_norm, n_pad, c_pad)

    kernel = functools.partial(_sage_tiled_kernel, n_pad=n_pad, tile=tile)
    return pl.pallas_call(
        kernel,
        out_shape=jax.ShapeDtypeStruct((n_pad, c_pad), jnp.float32),
        grid_spec=pltpu.PrefetchScalarGridSpec(
            num_scalar_prefetch=0,
            grid=(num_layers, n_pad // tile, n_pad // tile),
            in_specs=[
                pl.BlockSpec((tile, tile), lambda l, i, k: (i, k)),        # A_norm tile
                # x is streamed exactly once (layer 0 / row-tile 0 k-sweep primes
                # h_scr); pinning the block index elsewhere suppresses re-DMA.
                pl.BlockSpec((tile, c_pad),
                             lambda l, i, k: (jnp.where((l == 0) & (i == 0), k, 0), 0)),
                pl.BlockSpec((1, c_pad, c_pad), lambda l, i, k: (l, 0, 0)),  # Wl (folded)
                pl.BlockSpec((1, c_pad, c_pad), lambda l, i, k: (l, 0, 0)),  # Wr (folded)
                pl.BlockSpec((1, 8, c_pad), lambda l, i, k: (l, 0, 0)),      # bias/shift
            ],
            out_specs=pl.BlockSpec((tile, c_pad), lambda l, i, k: (i, 0)),
            scratch_shapes=[
                pltpu.VMEM((tile, c_pad), jnp.float32),            # aggregation accumulator
                pltpu.VMEM((2 * n_pad, c_pad), jnp.bfloat16),      # resident h (ping-pong)
            ],
        ),
        compiler_params=pltpu.CompilerParams(
            # h lives in per-core VMEM scratch, so all axes stay sequential.
            dimension_semantics=("arbitrary", "arbitrary", "arbitrary"),
            vmem_limit_bytes=vmem_budget,
        ),
    )(a_p, x_p, wl_all, wr_all, t_all)


def sage_forward(params, x, a_norm, *, force_tiled=False):
    """Multi-layer GraphSAGE forward (eval mode) as fused Pallas kernels."""
    num_layers = len(params)
    n, _ = x.shape
    dims = [p["wl"].shape[0] for p in params] + [params[-1]["wl"].shape[1]]
    c_pad = LANE * pl.cdiv(max(dims), LANE)
    c_out = params[-1]["wl"].shape[1]
    vmem_budget = _vmem_limit_bytes()

    # Gridless-style fast path when the whole padded graph fits comfortably in VMEM.
    n_pad_small = 128 * pl.cdiv(n, 128)
    fast_bytes = (2 * n_pad_small * n_pad_small * 2        # A (double-buffered)
                  + 2 * n_pad_small * c_pad * 2            # x
                  + 2 * n_pad_small * c_pad * 4            # output block
                  + n_pad_small * c_pad * 2                # resident h scratch
                  + num_layers * (2 * c_pad * c_pad * 2 + 8 * c_pad * 4) * 2)
    if not force_tiled and fast_bytes <= vmem_budget // 2:
        out = _sage_forward_small(params, x, a_norm, n_pad_small, c_pad, vmem_budget)
    else:
        out = _sage_forward_tiled(params, x, a_norm, c_pad, vmem_budget)
    return out[:n, :c_out]


# ---------------------------------------------------------------------------
# Deterministic example inputs + references
# ---------------------------------------------------------------------------
def init_sage_params(key, in_channels, hidden_channels, out_channels, num_layers):
    """Deterministic parameter init mirroring the torch module's shapes."""
    dims = [in_channels] + [hidden_channels] * (num_layers - 1) + [out_channels]
    params = []
    for li in range(num_layers):
        c_in, c_out = dims[li], dims[li + 1]
        key, k1, k2, k3, k4, k5, k6, k7 = jax.random.split(key, 8)
        scale = 1.0 / jnp.sqrt(jnp.float32(c_in))
        layer = {
            # weights stored [in, out] (transposed vs torch's [out, in])
            "wl": jax.random.uniform(k1, (c_in, c_out), jnp.float32, -scale, scale),
            "wr": jax.random.uniform(k2, (c_in, c_out), jnp.float32, -scale, scale),
            "bl": jax.random.uniform(k3, (1, c_out), jnp.float32, -scale, scale),
        }
        if li < num_layers - 1:
            # BatchNorm1d(hidden): eval-mode running stats + affine params
            layer["gamma"] = 1.0 + 0.1 * jax.random.normal(k4, (1, c_out), jnp.float32)
            layer["beta"] = 0.1 * jax.random.normal(k5, (1, c_out), jnp.float32)
            layer["mean"] = 0.1 * jax.random.normal(k6, (1, c_out), jnp.float32)
            layer["var"] = 1.0 + 0.1 * jnp.abs(jax.random.normal(k7, (1, c_out), jnp.float32))
        params.append(layer)
    return params


def build_row_normalized_adj(key, n):
    """Random undirected graph as a dense row-normalized (mean-agg) matrix."""
    a = jax.random.bernoulli(key, p=0.1, shape=(n, n)).astype(jnp.float32)
    a = jnp.maximum(a, a.T)                        # symmetric
    a = a * (1.0 - jnp.eye(n, dtype=jnp.float32))  # no self loops
    deg = jnp.sum(a, axis=1, keepdims=True)
    return a / jnp.maximum(deg, 1.0)


def quantized_ref_forward(params, x, a_norm):
    """Pure-JAX mirror of the kernel numerics (bf16 operands, f32 accumulation)."""
    num_layers = len(params)
    a = a_norm.astype(jnp.bfloat16)
    h = x.astype(jnp.bfloat16)
    out = None
    for li, p in enumerate(params):
        wl, wr, t = _fold_bn_into_layer(p, li == num_layers - 1)
        agg = jnp.dot(a, h, preferred_element_type=jnp.float32)
        o = (jnp.dot(agg.astype(jnp.bfloat16), wl.astype(jnp.bfloat16),
                     preferred_element_type=jnp.float32)
             + jnp.dot(h, wr.astype(jnp.bfloat16),
                       preferred_element_type=jnp.float32)
             + t)
        if li < num_layers - 1:
            o = jnp.maximum(o, 0.0)
        h = o.astype(jnp.bfloat16)
        out = o
    return out


def ref_forward_f32(params, x, a, eps=1e-5):
    """Full-precision eval-mode reference of the torch module's math."""
    hi = jax.lax.Precision.HIGHEST
    h = x
    num_layers = len(params)
    for li, p in enumerate(params):
        agg = jnp.dot(a, h, precision=hi)
        o = jnp.dot(agg, p["wl"], precision=hi) + jnp.dot(h, p["wr"], precision=hi) + p["bl"]
        if li < num_layers - 1:
            o = (o - p["mean"]) * jax.lax.rsqrt(p["var"] + eps) * p["gamma"] + p["beta"]
            o = jnp.maximum(o, 0.0)
        h = o
    return h


if __name__ == "__main__":
    key = jax.random.PRNGKey(0)
    k_adj, k_feat, k_par = jax.random.split(key, 3)

    # Small, module-consistent shapes (padded to 256 nodes / 128 lanes inside).
    N = 200
    in_channels, hidden_channels, out_channels = 16, 32, 8
    num_layers = 3
    dropout = 0.5  # eval mode -> identity

    a_norm = build_row_normalized_adj(k_adj, N)
    x = jax.random.normal(k_feat, (N, in_channels), jnp.float32)
    params = init_sage_params(k_par, in_channels, hidden_channels,
                              out_channels, num_layers)

    ref_q = quantized_ref_forward(params, x, a_norm)
    ref_f = ref_forward_f32(params, x, a_norm)

    # Fast path (whole graph resident in VMEM).
    fwd_fast = jax.jit(sage_forward)
    out_fast = jax.block_until_ready(fwd_fast(params, x, a_norm))
    assert out_fast.shape == (N, out_channels), out_fast.shape

    # Tiled path (forced, exercises the large-graph code with a 1x1 tile grid).
    fwd_tiled = jax.jit(functools.partial(sage_forward, force_tiled=True))
    out_tiled = jax.block_until_ready(fwd_tiled(params, x, a_norm))
    assert out_tiled.shape == (N, out_channels), out_tiled.shape

    for name, out in (("fast", out_fast), ("tiled", out_tiled)):
        # Tight check against a pure-JAX mirror of the kernel's bf16/f32 numerics.
        rel_q = float(jnp.linalg.norm(out - ref_q) / jnp.linalg.norm(ref_q))
        assert rel_q < 5e-3, (name, rel_q)
        # Loose check against the full-f32 semantics of the torch module
        # (tolerance covers the intentional bf16 cast of A_norm / activations / weights).
        rel_f = float(jnp.linalg.norm(out - ref_f) / jnp.linalg.norm(ref_f))
        assert rel_f < 5e-2, (name, rel_f)

    print("KERNEL_OK")
</pallas_src>

<mosaic_0001>
module attributes {stable_mosaic.version = 11 : i64} {
  func.func @_sage_small_kernel(%arg0: i32, %arg1: memref<256x256xbf16, #tpu.memory_space<vmem>>, %arg2: memref<256x128xbf16, #tpu.memory_space<vmem>>, %arg3: memref<1x128x128xbf16, #tpu.memory_space<vmem>>, %arg4: memref<1x128x128xbf16, #tpu.memory_space<vmem>>, %arg5: memref<1x8x128xf32, #tpu.memory_space<vmem>>, %arg6: memref<256x128xf32, #tpu.memory_space<vmem>>, %arg7: memref<256x128xbf16, #tpu.memory_space<vmem>>) attributes {dimension_semantics = [#tpu.dimension_semantics<arbitrary>], iteration_bounds = array<i64: 3>, scalar_prefetch = 0 : i64, scratch_operands = 1 : i64, tpu.core_type = #tpu.core_type<tc>, window_params = [{pipeline_mode = #tpu.pipeline_mode<synchronous>, transform_indices = @transform_0, window_bounds = array<i64: 256, 256>}, {pipeline_mode = #tpu.pipeline_mode<synchronous>, transform_indices = @transform_1, window_bounds = array<i64: 256, 128>}, {transform_indices = @transform_2, window_bounds = array<i64: 1, 128, 128>}, {transform_indices = @transform_3, window_bounds = array<i64: 1, 128, 128>}, {transform_indices = @transform_4, window_bounds = array<i64: 1, 8, 128>}, {pipeline_mode = #tpu.pipeline_mode<synchronous>, transform_indices = @transform_5, window_bounds = array<i64: 256, 128>}]} {
    %c0_i32 = arith.constant 0 : i32
    %0 = arith.cmpi eq, %arg0, %c0_i32 : i32
    %1 = arith.extui %0 : i1 to i32
    %c0_i32_0 = arith.constant 0 : i32
    %2 = arith.cmpi ne, %1, %c0_i32_0 : i32
    scf.if %2 {
      %c0_20 = arith.constant 0 : index
      %c0_21 = arith.constant 0 : index
      %25 = vector.load %arg2[%c0_20, %c0_21] : memref<256x128xbf16, #tpu.memory_space<vmem>>, vector<256x128xbf16>
      %c0_22 = arith.constant 0 : index
      %c0_23 = arith.constant 0 : index
      %26 = vector.load %arg7[%c0_22, %c0_23] : memref<256x128xbf16, #tpu.memory_space<vmem>>, vector<256x128xbf16>
      tpu.vector_store %arg7[%c0_22, %c0_23], %25 {strides = array<i32>} : memref<256x128xbf16, #tpu.memory_space<vmem>>, vector<256x128xbf16>,
    } else {
    }
    %c0 = arith.constant 0 : index
    %c0_1 = arith.constant 0 : index
    %3 = vector.load %arg7[%c0, %c0_1] : memref<256x128xbf16, #tpu.memory_space<vmem>>, vector<256x128xbf16>
    %c0_2 = arith.constant 0 : index
    %c0_3 = arith.constant 0 : index
    %4 = vector.load %arg1[%c0_2, %c0_3] : memref<256x256xbf16, #tpu.memory_space<vmem>>, vector<256x256xbf16>
    %cst = arith.constant dense<0.000000e+00> : vector<256x128xf32>
    %5 = tpu.matmul %4, %3, %cst {dimension_numbers = #tpu.dot_dimension_numbers<[1], [0], [0], [1], [0, 0, 1, 1], [], []>} : vector<256x256xbf16>, vector<256x128xbf16>, vector<256x128xf32> -> vector<256x128xf32>
    %6 = arith.truncf %5 : vector<256x128xf32> to vector<256x128xbf16>
    %c0_4 = arith.constant 0 : index
    %c0_5 = arith.constant 0 : index
    %c0_6 = arith.constant 0 : index
    %7 = vector.load %arg3[%c0_4, %c0_5, %c0_6] : memref<1x128x128xbf16, #tpu.memory_space<vmem>>, vector<1x128x128xbf16>
    %8 = vector.shape_cast %7 : vector<1x128x128xbf16> to vector<128x128xbf16>
    %cst_7 = arith.constant dense<0.000000e+00> : vector<256x128xf32>
    %9 = tpu.matmul %6, %8, %cst_7 {dimension_numbers = #tpu.dot_dimension_numbers<[1], [0], [0], [1], [0, 0, 1, 1], [], []>} : vector<256x128xbf16>, vector<128x128xbf16>, vector<256x128xf32> -> vector<256x128xf32>
    %c0_8 = arith.constant 0 : index
    %c0_9 = arith.constant 0 : index
    %c0_10 = arith.constant 0 : index
    %10 = vector.load %arg4[%c0_8, %c0_9, %c0_10] : memref<1x128x128xbf16, #tpu.memory_space<vmem>>, vector<1x128x128xbf16>
    %11 = vector.shape_cast %10 : vector<1x128x128xbf16> to vector<128x128xbf16>
    %cst_11 = arith.constant dense<0.000000e+00> : vector<256x128xf32>
    %12 = tpu.matmul %3, %11, %cst_11 {dimension_numbers = #tpu.dot_dimension_numbers<[1], [0], [0], [1], [0, 0, 1, 1], [], []>} : vector<256x128xbf16>, vector<128x128xbf16>, vector<256x128xf32> -> vector<256x128xf32>
    %13 = arith.addf %9, %12 : vector<256x128xf32>
    %c0_12 = arith.constant 0 : index
    %c0_13 = arith.constant 0 : index
    %c0_14 = arith.constant 0 : index
    %14 = vector.load %arg5[%c0_12, %c0_13, %c0_14] : memref<1x8x128xf32, #tpu.memory_space<vmem>>, vector<1x1x128xf32>
    %15 = vector.shape_cast %14 : vector<1x1x128xf32> to vector<1x128xf32>
    %16 = vector.broadcast %15 : vector<1x128xf32> to vector<256x128xf32>
    %17 = arith.addf %13, %16 : vector<256x128xf32>
    %c2_i32 = arith.constant 2 : i32
    %18 = arith.cmpi eq, %arg0, %c2_i32 : i32
    %cst_15 = arith.constant 0.000000e+00 : f32
    %19 = vector.broadcast %cst_15 : f32 to vector<256x128xf32>
    %20 = arith.maximumf %17, %19 : vector<256x128xf32>
    %21 = arith.select %18, %17, %20 : vector<256x128xf32>
    %22 = arith.truncf %21 : vector<256x128xf32> to vector<256x128xbf16>
    %c0_16 = arith.constant 0 : index
    %c0_17 = arith.constant 0 : index
    %23 = vector.load %arg7[%c0_16, %c0_17] : memref<256x128xbf16, #tpu.memory_space<vmem>>, vector<256x128xbf16>
    tpu.vector_store %arg7[%c0_16, %c0_17], %22 {strides = array<i32>} : memref<256x128xbf16, #tpu.memory_space<vmem>>, vector<256x128xbf16>,
    %c0_18 = arith.constant 0 : index
    %c0_19 = arith.constant 0 : index
    %24 = vector.load %arg6[%c0_18, %c0_19] : memref<256x128xf32, #tpu.memory_space<vmem>>, vector<256x128xf32>
    tpu.vector_store %arg6[%c0_18, %c0_19], %21 {strides = array<i32>} : memref<256x128xf32, #tpu.memory_space<vmem>>, vector<256x128xf32>,
    return
  }
  func.func @transform_0(%arg0: i32) -> (i32, i32) {
    %c0_i32 = arith.constant 0 : i32
    %c0_i32_0 = arith.constant 0 : i32
    %c0_i32_1 = arith.constant 0 : i32
    return %c0_i32, %c0_i32_0 : i32, i32
  }
  func.func @transform_1(%arg0: i32) -> (i32, i32) {
    %c0_i32 = arith.constant 0 : i32
    %c0_i32_0 = arith.constant 0 : i32
    %c0_i32_1 = arith.constant 0 : i32
    return %c0_i32, %c0_i32_0 : i32, i32
  }
  func.func @transform_2(%arg0: i32) -> (i32, i32, i32) {
    %c0_i32 = arith.constant 0 : i32
    %c0_i32_0 = arith.constant 0 : i32
    %c0_i32_1 = arith.constant 0 : i32
    return %arg0, %c0_i32, %c0_i32_0 : i32, i32, i32
  }
  func.func @transform_3(%arg0: i32) -> (i32, i32, i32) {
    %c0_i32 = arith.constant 0 : i32
    %c0_i32_0 = arith.constant 0 : i32
    %c0_i32_1 = arith.constant 0 : i32
    return %arg0, %c0_i32, %c0_i32_0 : i32, i32, i32
  }
  func.func @transform_4(%arg0: i32) -> (i32, i32, i32) {
    %c0_i32 = arith.constant 0 : i32
    %c0_i32_0 = arith.constant 0 : i32
    %c0_i32_1 = arith.constant 0 : i32
    return %arg0, %c0_i32, %c0_i32_0 : i32, i32, i32
  }
  func.func @transform_5(%arg0: i32) -> (i32, i32) {
    %c0_i32 = arith.constant 0 : i32
    %c0_i32_0 = arith.constant 0 : i32
    %c0_i32_1 = arith.constant 0 : i32
    return %c0_i32, %c0_i32_0 : i32, i32
  }
}

</mosaic_0001>

<bundles_post_ra>
// kernel: sage_forward.1
= control target key start
LH: loop header
LB: loop body
LE: loop exit
PB: predicated region body
PF: predicated region fallthrough
CT: control target
= control target key end

     0   :  { %s2232_s18 = smov 0   ;;  %s2771_s0 = inlined_call_operand.vmem [shape: bf16[256,256], index: 0, kind: input, shape index: {}]   ;;  %s2772_s1 = inlined_call_operand.vmem [shape: bf16[256,128], index: 1, kind: input, shape index: {}]   ;;  %s2773_s2 = inlined_call_operand.vmem [shape: bf16[3,128,128], index: 2, kind: input, shape index: {}]   ;;  %s2774_s3 = inlined_call_operand.vmem [shape: bf16[3,128,128], index: 3, kind: input, shape index: {}]   ;;  %s2775_s4 = inlined_call_operand.vmem [shape: f32[3,8,128], index: 4, kind: input, shape index: {}]   ;;  %s2776_s5 = inlined_call_operand.vmem [shape: f32[256,128], index: 5, kind: output, shape index: {}]  }
   0x1 LB: > { %s2238_s19 = sadd.s32 4294967295, %s2200_s18   ;;  %p1615_p0 = scmp.ge.s32.totalorder %s2200_s18, 1  ;;  %s2200_s18 = sphi %s2232_s18, %s15_s18  }
   0x2   : > { %p201_p1 = scmp.lt.s32.totalorder %s2200_s18, 4 }
   0x4   : > { %p202_p2 = pnand %p1615_p0, %p201_p1 }
   0x5   : > { %p233_p3 = scmp.lt.s32.totalorder (!%p202_p2), %s2238_s19, 2  ;;  %p1621_p4 = scmp.ne.s32.totalorder (!%p202_p2), %s2238_s19, 0 }
   0x6   : > { %205 = sbr.rel (%p202_p2) target bundleno = 597 (0x255), region = 40 }
   0xb   : > { %s234_s20 = scalar_select %p233_p3, %s2238_s19, 2 }
   0xc   : > { %251 = sbr.rel (%p1621_p4) target bundleno = 26 (0x1a), region = 44 }
   0xd   : > { %s1721_s21 = sshll.u32 %s234_s20, 6  ;;  %s1620_s22 = sshll.u32 %s234_s20, 3 }
   0xe   : > { %s2247_s25 = scalar_lea.vmem %s2773_s2, %s1721_s21  ;;  %s2252_s28 = scalar_lea.vmem %s2774_s3, %s1721_s21 }
   0xf   : > { %s2257_s6 = scalar_lea.vmem %s2775_s4, %s1620_s22 }
  0x11   : > { %v252_v0 = vld [vmem:[%s2772_s1] sm:$0xff]   ;;  %v254_v1 = vld [vmem:[%s2772_s1 + $0x8] sm:$0xff]   ;;  %v256_v2 = vld [vmem:[%s2772_s1 + $0x10] sm:$0xff]  }
  0x12   : > { %284 = vst [vmem:[#allocation2] sm:$0xff] %v252_v0   ;;  %286 = vst [vmem:[#allocation2 + $0x8] sm:$0xff] %v254_v1   ;;  %v258_v3 = vld [vmem:[%s2772_s1 + $0x18] sm:$0xff]   ;;  %v260_v4 = vld [vmem:[%s2772_s1 + $0x20] sm:$0xff]  }
  0x13   : > { %288 = vst [vmem:[#allocation2 + $0x10] sm:$0xff] %v256_v2   ;;  %v262_v5 = vld [vmem:[%s2772_s1 + $0x28] sm:$0xff]   ;;  %290 = vst [vmem:[#allocation2 + $0x18] sm:$0xff] %v258_v3   ;;  %v264_v6 = vld [vmem:[%s2772_s1 + $0x30] sm:$0xff]  }
  0x14   : > { %292 = vst [vmem:[#allocation2 + $0x20] sm:$0xff] %v260_v4   ;;  %294 = vst [vmem:[#allocation2 + $0x28] sm:$0xff] %v262_v5   ;;  %v266_v7 = vld [vmem:[%s2772_s1 + $0x38] sm:$0xff]   ;;  %v268_v8 = vld [vmem:[%s2772_s1 + $0x40] sm:$0xff]  }
  0x15   : > { %296 = vst [vmem:[#allocation2 + $0x30] sm:$0xff] %v264_v6   ;;  %298 = vst [vmem:[#allocation2 + $0x38] sm:$0xff] %v266_v7   ;;  %v270_v9 = vld [vmem:[%s2772_s1 + $0x48] sm:$0xff]   ;;  %v272_v10 = vld [vmem:[%s2772_s1 + $0x50] sm:$0xff]  }
  0x16   : > { %300 = vst [vmem:[#allocation2 + $0x40] sm:$0xff] %v268_v8   ;;  %v274_v11 = vld [vmem:[%s2772_s1 + $0x58] sm:$0xff]   ;;  %302 = vst [vmem:[#allocation2 + $0x48] sm:$0xff] %v270_v9   ;;  %v276_v12 = vld [vmem:[%s2772_s1 + $0x60] sm:$0xff]  }
  0x17   : > { %304 = vst [vmem:[#allocation2 + $0x50] sm:$0xff] %v272_v10   ;;  %306 = vst [vmem:[#allocation2 + $0x58] sm:$0xff] %v274_v11   ;;  %v278_v13 = vld [vmem:[%s2772_s1 + $0x68] sm:$0xff]   ;;  %v280_v14 = vld [vmem:[%s2772_s1 + $0x70] sm:$0xff]  }
  0x18   : > { %308 = vst [vmem:[#allocation2 + $0x60] sm:$0xff] %v276_v12   ;;  %310 = vst [vmem:[#allocation2 + $0x68] sm:$0xff] %v278_v13   ;;  %v282_v15 = vld [vmem:[%s2772_s1 + $0x78] sm:$0xff]  }
  0x19   : > { %312 = vst [vmem:[#allocation2 + $0x70] sm:$0xff] %v280_v14   ;;  %314 = vst [vmem:[#allocation2 + $0x78] sm:$0xff] %v282_v15  }
  0x1a PF: > { %v2333_v25 = vld [vmem:[#allocation2 + $0x18] sm:$0xff]   ;;  %v2129_v26 = vld [vmem:[#allocation2] sm:$0xff]   ;;  %v2125_v29 = vld [vmem:[#allocation2 + $0x10] sm:$0xff]   ;;  %p1300_p5 = scmp.eq.s32.totalorder %s2238_s19, 2 }
  0x1b   : > { %v2322_v21 = vld [vmem:[#allocation2 + $0x28] sm:$0xff]   ;;  %v2328_v23 = vld [vmem:[#allocation2 + $0x20] sm:$0xff]   ;;  %2026 = vmatprep.mubr.bf16.mxu1 %v2129_v26  ;;  %v2133_v34 = vld [vmem:[%s2771_s0 + $0x14] ss:$8 sps:$4 sm:$0xff]  }
  0x1c   : > { %v2310_v17 = vld [vmem:[#allocation2 + $0x38] sm:$0xff]   ;;  %v2316_v19 = vld [vmem:[#allocation2 + $0x30] sm:$0xff]   ;;  %v2132_v28 = vld [vmem:[%s2771_s0 + $0x4] ss:$8 sps:$4 sm:$0xff]   ;;  %s1333_s22 = scalar_select %p1300_p5, 1, 0 }
  0x1d   : > { %668 = vmatprep.mubr.bf16.mxu0 %v2132_v28  ;;  %v2344_v30 = vld [vmem:[#allocation2 + $0x48] sm:$0xff]   ;;  %v2347_v32 = vld [vmem:[#allocation2 + $0x40] sm:$0xff]   ;;  %v2175_v35 = vld [vmem:[%s2252_s28 + $0x38] sm:$0xff]  }
  0x1e   : > { %v2331_v24 = vld [vmem:[#allocation2 + $0x58] sm:$0xff]   ;;  %v2337_v27 = vld [vmem:[#allocation2 + $0x50] sm:$0xff]   ;;  %v2127_v31 = vld [vmem:[#allocation2 + $0x8] sm:$0xff]   ;;  %2010 = vmatprep.subr.bf16.mxu1 %v2175_v35 }
  0x1f   : > { %v2319_v20 = vld [vmem:[#allocation2 + $0x68] sm:$0xff]   ;;  %v2325_v22 = vld [vmem:[#allocation2 + $0x60] sm:$0xff]   ;;  %v2176_v36 = vld [vmem:[%s2252_s28 + $0x30] sm:$0xff]   ;;  %2011 = vmatpush3.bf16.msra.mxu1 %v2175_v35 }
  0x20   : > { %v2308_v16 = vld [vmem:[#allocation2 + $0x78] sm:$0xff]   ;;  %v2313_v18 = vld [vmem:[#allocation2 + $0x70] sm:$0xff]   ;;  %v2130_v33 = vld [vmem:[%s2771_s0] ss:$8 sps:$4 sm:$0xff]   ;;  %2012 = vmatprep.subr.bf16.mxu1 %v2176_v36 }
  0x21   : > { %1850 = vmatprep.subr.bf16.mxu0 %v2308_v16  ;;  %v2135_v37 = vld [vmem:[%s2771_s0 + $0x10] ss:$8 sps:$4 sm:$0xff]   ;;  %v2136_v38 = vld [vmem:[%s2771_s0 + $0x24] ss:$8 sps:$4 sm:$0xff]   ;;  %v2138_v41 = vld [vmem:[%s2771_s0 + $0x20] ss:$8 sps:$4 sm:$0xff]  }
  0x22   : > { %1851 = vmatpush3.bf16.msra.mxu0 %v2310_v17  ;;  %v2180_v39 = vld [vmem:[%s2252_s28 + $0x28] sm:$0xff]   ;;  %v2181_v40 = vld [vmem:[%s2252_s28 + $0x20] sm:$0xff]   ;;  %v2139_v42 = vld [vmem:[%s2771_s0 + $0x34] ss:$8 sps:$4 sm:$0xff]  }
  0x23   : > { %1852 = vmatprep.subr.bf16.mxu0 %v2313_v18  ;;  %2013 = vmatpush3.bf16.msra.mxu1 %v2176_v36  ;;  %v2182_v43 = vld [vmem:[%s2252_s28 + $0x18] sm:$0xff]   ;;  %v2183_v44 = vld [vmem:[%s2252_s28 + $0x10] sm:$0xff]   ;;  %v2142_v46 = vld [vmem:[%s2771_s0 + $0x44] ss:$8 sps:$4 sm:$0xff]  }
  0x24   : > { %2014 = vmatprep.subr.bf16.mxu1 %v2180_v39  ;;  %v2141_v45 = vld [vmem:[%s2771_s0 + $0x30] ss:$8 sps:$4 sm:$0xff]   ;;  %v2184_v47 = vld [vmem:[%s2252_s28 + $0x8] sm:$0xff]   ;;  %v2185_v48 = vld [vmem:[%s2252_s28] sm:$0xff]  }
  0x25   : > { %v2144_v49 = vld [vmem:[%s2771_s0 + $0x40] ss:$8 sps:$4 sm:$0xff]   ;;  %v2145_v50 = vld [vmem:[%s2771_s0 + $0x54] ss:$8 sps:$4 sm:$0xff]   ;;  %v2147_v53 = vld [vmem:[%s2771_s0 + $0x50] ss:$8 sps:$4 sm:$0xff]  }
  0x26   : > { %1853 = vmatpush3.bf16.msra.mxu0 %v2316_v19  ;;  %v2186_v51 = vld [vmem:[%s2247_s25 + $0x38] sm:$0xff]   ;;  %v2187_v52 = vld [vmem:[%s2247_s25 + $0x30] sm:$0xff]   ;;  %v2148_v54 = vld [vmem:[%s2771_s0 + $0x64] ss:$8 sps:$4 sm:$0xff]  }
  0x27   : > { %1854 = vmatprep.subr.bf16.mxu0 %v2319_v20  ;;  %2015 = vmatpush3.bf16.msra.mxu1 %v2180_v39  ;;  %v2188_v55 = vld [vmem:[%s2247_s25 + $0x28] sm:$0xff]   ;;  %v2189_v56 = vld [vmem:[%s2247_s25 + $0x20] sm:$0xff]   ;;  %v2151_v58 = vld [vmem:[%s2771_s0 + $0x74] ss:$8 sps:$4 sm:$0xff]  }
  0x28   : > { %2016 = vmatprep.subr.bf16.mxu1 %v2181_v40  ;;  %v2150_v57 = vld [vmem:[%s2771_s0 + $0x60] ss:$8 sps:$4 sm:$0xff]   ;;  %v2153_v59 = vld [vmem:[%s2771_s0 + $0x70] ss:$8 sps:$4 sm:$0xff]   ;;  %v2154_v60 = vld [vmem:[%s2771_s0 + $0x84] ss:$8 sps:$4 sm:$0xff]  }
  0x29   : > { %v2156_v61 = vld [vmem:[%s2771_s0 + $0x80] ss:$8 sps:$4 sm:$0xff]   ;;  %v2157_v62 = vld [vmem:[%s2771_s0 + $0x94] ss:$8 sps:$4 sm:$0xff]   ;;  %v2159_v0 = vld [vmem:[%s2771_s0 + $0x90] ss:$8 sps:$4 sm:$0xff]  }
  0x2a   : > { %1855 = vmatpush3.bf16.msra.mxu0 %v2322_v21  ;;  %v2190_v63 = vld [vmem:[%s2247_s25 + $0x18] sm:$0xff]   ;;  %v2160_v1 = vld [vmem:[%s2771_s0 + $0xa4] ss:$8 sps:$4 sm:$0xff]   ;;  %v2191_v2 = vld [vmem:[%s2247_s25 + $0x10] sm:$0xff]  }
  0x2b   : > { %1856 = vmatprep.subr.bf16.mxu0 %v2325_v22  ;;  %2017 = vmatpush3.bf16.msra.mxu1 %v2181_v40  ;;  %v2192_v3 = vld [vmem:[%s2247_s25 + $0x8] sm:$0xff]   ;;  %v2163_v5 = vld [vmem:[%s2771_s0 + $0xb4] ss:$8 sps:$4 sm:$0xff]   ;;  %v2193_v6 = vld [vmem:[%s2247_s25] sm:$0xff]  }
  0x2c   : > { %2018 = vmatprep.subr.bf16.mxu1 %v2182_v43  ;;  %v2162_v4 = vld [vmem:[%s2771_s0 + $0xa0] ss:$8 sps:$4 sm:$0xff]   ;;  %v2165_v7 = vld [vmem:[%s2771_s0 + $0xb0] ss:$8 sps:$4 sm:$0xff]   ;;  %v2166_v8 = vld [vmem:[%s2771_s0 + $0xc4] ss:$8 sps:$4 sm:$0xff]  }
  0x2d   : > { %v2168_v9 = vld [vmem:[%s2771_s0 + $0xc0] ss:$8 sps:$4 sm:$0xff]   ;;  %v2169_v10 = vld [vmem:[%s2771_s0 + $0xd4] ss:$8 sps:$4 sm:$0xff]   ;;  %v2171_v11 = vld [vmem:[%s2771_s0 + $0xd0] ss:$8 sps:$4 sm:$0xff]  }
  0x2e   : > { %1857 = vmatpush3.bf16.msra.mxu0 %v2328_v23  ;;  %v2172_v12 = vld [vmem:[%s2771_s0 + $0xe4] ss:$8 sps:$4 sm:$0xff]   ;;  %v2174_v13 = vld [vmem:[%s2771_s0 + $0xe0] ss:$8 sps:$4 sm:$0xff]   ;;  %v2177_v14 = vld [vmem:[%s2771_s0 + $0xf4] ss:$8 sps:$4 sm:$0xff]  }
  0x2f   : > { %1858 = vmatprep.subr.bf16.mxu0 %v2331_v24  ;;  %2019 = vmatpush3.bf16.msra.mxu1 %v2182_v43  ;;  %v2179_v15 = vld [vmem:[%s2771_s0 + $0xf0] ss:$8 sps:$4 sm:$0xff]  }
  0x30   : > { %2020 = vmatprep.subr.bf16.mxu1 %v2183_v44 }
  0x32   : > { %1859 = vmatpush3.bf16.msra.mxu0 %v2333_v25 }
  0x33   : > { %1860 = vmatprep.subr.bf16.mxu0 %v2337_v27  ;;  %2021 = vmatpush3.bf16.msra.mxu1 %v2183_v44 }
  0x34   : > { %2022 = vmatprep.subr.bf16.mxu1 %v2184_v47 }
  0x36   : > { %1861 = vmatpush3.bf16.msra.mxu0 %v2125_v29 }
  0x37   : > { %1862 = vmatprep.subr.bf16.mxu0 %v2344_v30  ;;  %2023 = vmatpush3.bf16.msra.mxu1 %v2184_v47 }
  0x38   : > { %2024 = vmatprep.subr.bf16.mxu1 %v2185_v48 }
  0x3a   : > { %1863 = vmatpush3.bf16.msra.mxu0 %v2127_v31 }
  0x3b   : > { %1864 = vmatprep.subr.bf16.mxu0 %v2347_v32  ;;  %2025 = vmatpush3.bf16.msra.mxu1 %v2185_v48 }
  0x3c   : > { %2058 = vmatprep.subr.bf16.mxu1 %v2186_v51 }
  0x3e   : > { %1865 = vmatpush3.bf16.msra.mxu0 %v2129_v26  ;;  %2027 = vmatmul.mubr.bf16.vlgmr.msra.gmra.mxu1 %v2127_v31 }
  0x3f   : > { %2030 = vmatprep.mubr.bf16.mxu1 %v2125_v29  ;;  %2059 = vmatpush3.bf16.msra.mxu1 %v2186_v51 }
  0x40   : > { %2060 = vmatprep.subr.bf16.mxu1 %v2187_v52 }
  0x41   : > { %669 = vmatmul.mubr.bf16.vlgmr.msra.gmra.mxu0 %v2130_v33 }
  0x42   : > { %676 = vmatprep.mubr.bf16.mxu0 %v2133_v34 }
  0x43   : > { %2061 = vmatpush3.bf16.msra.mxu1 %v2187_v52 }
  0x44   : > { %2062 = vmatprep.subr.bf16.mxu1 %v2188_v55 }
  0x46   : > { %2031 = vmatmul.mubr.bf16.gmra.mxu1 %v2333_v25 }
  0x47   : > { %2034 = vmatprep.mubr.bf16.mxu1 %v2328_v23  ;;  %2063 = vmatpush3.bf16.msra.mxu1 %v2188_v55 }
  0x48   : > { %2064 = vmatprep.subr.bf16.mxu1 %v2189_v56 }
  0x49   : > { %677 = vmatmul.mubr.bf16.gmra.mxu0 %v2135_v37 }
  0x4a   : > { %684 = vmatprep.mubr.bf16.mxu0 %v2136_v38 }
  0x4b   : > { %2065 = vmatpush3.bf16.msra.mxu1 %v2189_v56 }
  0x4c   : > { %2066 = vmatprep.subr.bf16.mxu1 %v2190_v63 }
  0x4e   : > { %2035 = vmatmul.mubr.bf16.gmra.mxu1 %v2322_v21 }
  0x4f   : > { %2038 = vmatprep.mubr.bf16.mxu1 %v2316_v19  ;;  %2067 = vmatpush3.bf16.msra.mxu1 %v2190_v63 }
  0x50   : > { %2068 = vmatprep.subr.bf16.mxu1 %v2191_v2 }
  0x51   : > { %685 = vmatmul.mubr.bf16.gmra.mxu0 %v2138_v41 }
  0x52   : > { %692 = vmatprep.mubr.bf16.mxu0 %v2139_v42 }
  0x53   : > { %2069 = vmatpush3.bf16.msra.mxu1 %v2191_v2 }
  0x54   : > { %2070 = vmatprep.subr.bf16.mxu1 %v2192_v3 }
  0x56   : > { %2039 = vmatmul.mubr.bf16.gmra.mxu1 %v2310_v17 }
  0x57   : > { %2042 = vmatprep.mubr.bf16.mxu1 %v2347_v32  ;;  %2071 = vmatpush3.bf16.msra.mxu1 %v2192_v3 }
  0x58   : > { %2072 = vmatprep.subr.bf16.mxu1 %v2193_v6 }
  0x59   : > { %693 = vmatmul.mubr.bf16.gmra.mxu0 %v2141_v45 }
  0x5a   : > { %700 = vmatprep.mubr.bf16.mxu0 %v2142_v46 }
  0x5b   : > { %2073 = vmatpush3.bf16.msra.mxu1 %v2193_v6 }
  0x5e   : > { %2043 = vmatmul.mubr.bf16.gmra.mxu1 %v2344_v30 }
  0x5f   : > { %2046 = vmatprep.mubr.bf16.mxu1 %v2337_v27 }
  0x61   : > { %701 = vmatmul.mubr.bf16.gmra.mxu0 %v2144_v49 }
  0x62   : > { %708 = vmatprep.mubr.bf16.mxu0 %v2145_v50 }
  0x66   : > { %2047 = vmatmul.mubr.bf16.gmra.mxu1 %v2331_v24 }
  0x67   : > { %2050 = vmatprep.mubr.bf16.mxu1 %v2325_v22 }
  0x69   : > { %709 = vmatmul.mubr.bf16.gmra.mxu0 %v2147_v53 }
  0x6a   : > { %716 = vmatprep.mubr.bf16.mxu0 %v2148_v54 }
  0x6e   : > { %2051 = vmatmul.mubr.bf16.gmra.mxu1 %v2319_v20 }
  0x6f   : > { %2054 = vmatprep.mubr.bf16.mxu1 %v2313_v18 }
  0x71   : > { %717 = vmatmul.mubr.bf16.gmra.mxu0 %v2150_v57 }
  0x72   : > { %724 = vmatprep.mubr.bf16.mxu0 %v2151_v58 }
  0x76   : > { %2055 = vmatmul.mubr.bf16.gmra.mxu1 %v2308_v16 }
  0x79   : > { %725 = vmatmul.mubr.bf16.gmra.mxu0 %v2153_v59 }
  0x7a   : > { %732 = vmatprep.mubr.bf16.mxu0 %v2154_v60 }
  0x81   : > { %733 = vmatmul.mubr.bf16.gmra.mxu0 %v2156_v61 }
  0x82   : > { %740 = vmatprep.mubr.bf16.mxu0 %v2157_v62 }
  0x89   : > { %741 = vmatmul.mubr.bf16.gmra.mxu0 %v2159_v0 }
  0x8a   : > { %748 = vmatprep.mubr.bf16.mxu0 %v2160_v1 }
  0x91   : > { %749 = vmatmul.mubr.bf16.gmra.mxu0 %v2162_v4 }
  0x92   : > { %756 = vmatprep.mubr.bf16.mxu0 %v2163_v5 }
  0x99   : > { %757 = vmatmul.mubr.bf16.gmra.mxu0 %v2165_v7 }
  0x9a   : > { %764 = vmatprep.mubr.bf16.mxu0 %v2166_v8 }
  0xa1   : > { %765 = vmatmul.mubr.bf16.gmra.mxu0 %v2168_v9 }
  0xa2   : > { %772 = vmatprep.mubr.bf16.mxu0 %v2169_v10 }
  0xa9   : > { %773 = vmatmul.mubr.bf16.gmra.mxu0 %v2171_v11 }
  0xaa   : > { %780 = vmatprep.mubr.bf16.mxu0 %v2172_v12 }
  0xb1   : > { %781 = vmatmul.mubr.bf16.gmra.mxu0 %v2174_v13 }
  0xb2   : > { %788 = vmatprep.mubr.bf16.mxu0 %v2177_v14 }
  0xb9   : > { %789 = vmatmul.mubr.bf16.gmra.mxu0 %v2179_v15 }
 0x101   : > { %v1866_v16 = vpop.f32.mrf.mxu0 }
 0x103   : > { %v1867_v17 = vpop.f32.mrf.mxu0 }
 0x104   : > { %v1868_v20 = vadd.f32 %v1867_v17, %v1866_v16 }
 0x105   : > { %v1869_v18 = vpop.f32.mrf.mxu0 }
 0x107   : > { %v1870_v19 = vpop.f32.mrf.mxu0 }
 0x108   : > { %v1871_v21 = vadd.f32 %v1870_v19, %v1869_v18 }
 0x109   : > { %v1872_v22 = vpop.f32.mrf.mxu0 }
 0x10a   : > { %v797_v23 = vpack.c.bf16 %v1871_v21, %v1868_v20 }
 0x10b   : > { %v1873_v24 = vpop.f32.mrf.mxu0 }
 0x10c   : > { %2074 = vmatprep.mubr.bf16.mxu1 %v797_v23  ;;  %v1874_v27 = vadd.f32 %v1873_v24, %v1872_v22  ;;  %v2472_v24 = vpop.f32.mrf.mxu1 }
 0x10d   : > { %v1875_v25 = vpop.f32.mrf.mxu0 }
 0x10f   : > { %v1876_v26 = vpop.f32.mrf.mxu0 }
 0x110   : > { %v1877_v28 = vadd.f32 %v1876_v26, %v1875_v25 }
 0x111   : > { %v1878_v29 = vpop.f32.mrf.mxu0 }
 0x112   : > { %v798_v30 = vpack.c.bf16 %v1877_v28, %v1874_v27 }
 0x113   : > { %v1879_v31 = vpop.f32.mrf.mxu0 }
 0x114   : > { %2075 = vmatmul.mubr.bf16.vlgmr.msra.gmra.mxu1 %v798_v30  ;;  %v1880_v34 = vadd.f32 %v1879_v31, %v1878_v29  ;;  %v2474_v29 = vpop.f32.mrf.mxu1 }
 0x115   : > { %v1881_v32 = vpop.f32.mrf.mxu0 }
 0x117   : > { %v1882_v33 = vpop.f32.mrf.mxu0 }
 0x118   : > { %v1883_v35 = vadd.f32 %v1882_v33, %v1881_v32  ;;  %v2476_v33 = vpop.f32.mrf.mxu1 }
 0x119   : > { %v1884_v36 = vpop.f32.mrf.mxu0 }
 0x11a   : > { %v799_v37 = vpack.c.bf16 %v1883_v35, %v1880_v34 }
 0x11b   : > { %v1885_v38 = vpop.f32.mrf.mxu0 }
 0x11c   : > { %2078 = vmatprep.mubr.bf16.mxu1 %v799_v37  ;;  %v1886_v41 = vadd.f32 %v1885_v38, %v1884_v36  ;;  %v2478_v38 = vpop.f32.mrf.mxu1 }
 0x11d   : > { %v1887_v39 = vpop.f32.mrf.mxu0 }
 0x11f   : > { %v1888_v40 = vpop.f32.mrf.mxu0 }
 0x120   : > { %v1889_v42 = vadd.f32 %v1888_v40, %v1887_v39 }
 0x121   : > { %v1890_v43 = vpop.f32.mrf.mxu0 }
 0x122   : > { %v800_v44 = vpack.c.bf16 %v1889_v42, %v1886_v41  ;;  %v2480_v42 = vpop.f32.mrf.mxu1 }
 0x123   : > { %v1891_v45 = vpop.f32.mrf.mxu0 }
 0x124   : > { %2079 = vmatmul.mubr.bf16.gmra.mxu1 %v800_v44  ;;  %v1892_v48 = vadd.f32 %v1891_v45, %v1890_v43 }
 0x125   : > { %v1893_v46 = vpop.f32.mrf.mxu0 }
 0x127   : > { %v1894_v47 = vpop.f32.mrf.mxu0 }
 0x128   : > { %v1895_v49 = vadd.f32 %v1894_v47, %v1893_v46  ;;  %v2482_v47 = vpop.f32.mrf.mxu1 }
 0x129   : > { %v1896_v50 = vpop.f32.mrf.mxu0 }
 0x12a   : > { %v801_v51 = vpack.c.bf16 %v1895_v49, %v1892_v48 }
 0x12b   : > { %v1897_v52 = vpop.f32.mrf.mxu0 }
 0x12c   : > { %2082 = vmatprep.mubr.bf16.mxu1 %v801_v51  ;;  %v1898_v55 = vadd.f32 %v1897_v52, %v1896_v50  ;;  %v2484_v51 = vpop.f32.mrf.mxu1 }
 0x12d   : > { %v1899_v53 = vpop.f32.mrf.mxu0 }
 0x12f   : > { %v1900_v54 = vpop.f32.mrf.mxu0 }
 0x130   : > { %v1901_v56 = vadd.f32 %v1900_v54, %v1899_v53 }
 0x131   : > { %v1902_v57 = vpop.f32.mrf.mxu0 }
 0x132   : > { %v802_v58 = vpack.c.bf16 %v1901_v56, %v1898_v55  ;;  %v2486_v56 = vpop.f32.mrf.mxu1 }
 0x133   : > { %v1903_v59 = vpop.f32.mrf.mxu0 }
 0x134   : > { %2083 = vmatmul.mubr.bf16.gmra.mxu1 %v802_v58  ;;  %v1904_v62 = vadd.f32 %v1903_v59, %v1902_v57 }
 0x135   : > { %v1905_v60 = vpop.f32.mrf.mxu0 }
 0x137   : > { %v1906_v61 = vpop.f32.mrf.mxu0 }
 0x138   : > { %v1907_v63 = vadd.f32 %v1906_v61, %v1905_v60  ;;  %v2488_v60 = vpop.f32.mrf.mxu1 }
 0x139   : > { %v1908_v0 = vpop.f32.mrf.mxu0 }
 0x13a   : > { %v803_v1 = vpack.c.bf16 %v1907_v63, %v1904_v62 }
 0x13b   : > { %v1909_v2 = vpop.f32.mrf.mxu0 }
 0x13c   : > { %2086 = vmatprep.mubr.bf16.mxu1 %v803_v1  ;;  %v1910_v5 = vadd.f32 %v1909_v2, %v1908_v0  ;;  %v2490_v1 = vpop.f32.mrf.mxu1 }
 0x13d   : > { %v1911_v3 = vpop.f32.mrf.mxu0 }
 0x13f   : > { %v1912_v4 = vpop.f32.mrf.mxu0 }
 0x140   : > { %v1913_v6 = vadd.f32 %v1912_v4, %v1911_v3 }
 0x141   : > { %v1914_v7 = vpop.f32.mrf.mxu0 }
 0x142   : > { %v804_v8 = vpack.c.bf16 %v1913_v6, %v1910_v5  ;;  %v2492_v5 = vpop.f32.mrf.mxu1 }
 0x143   : > { %v1915_v9 = vpop.f32.mrf.mxu0 }
 0x144   : > { %2087 = vmatmul.mubr.bf16.gmra.mxu1 %v804_v8  ;;  %v1916_v12 = vadd.f32 %v1915_v9, %v1914_v7 }
 0x145   : > { %v1917_v10 = vpop.f32.mrf.mxu0 }
 0x147   : > { %v1918_v11 = vpop.f32.mrf.mxu0 }
 0x148   : > { %v1919_v13 = vadd.f32 %v1918_v11, %v1917_v10  ;;  %v2494_v10 = vpop.f32.mrf.mxu1 }
 0x149   : > { %v1920_v14 = vpop.f32.mrf.mxu0 }
 0x14a   : > { %v805_v15 = vpack.c.bf16 %v1919_v13, %v1916_v12  ;;  %v2496_v12 = vpop.f32.mrf.mxu1 }
 0x14b   : > { %v1921_v16 = vpop.f32.mrf.mxu0 }
 0x14c   : > { %2090 = vmatprep.mubr.bf16.mxu1 %v805_v15  ;;  %v1922_v19 = vadd.f32 %v1921_v16, %v1920_v14  ;;  %v2498_v13 = vpop.f32.mrf.mxu1 }
 0x14d   : > { %v1923_v17 = vpop.f32.mrf.mxu0 }
 0x14e   : > { %v2500_v14 = vpop.f32.mrf.mxu1 }
 0x14f   : > { %v1924_v18 = vpop.f32.mrf.mxu0 }
 0x150   : > { %v1925_v20 = vadd.f32 %v1924_v18, %v1923_v17  ;;  %v2502_v15 = vpop.f32.mrf.mxu1 }
 0x151   : > { %v1926_v21 = vpop.f32.mrf.mxu0 }
 0x152   : > { %v806_v22 = vpack.c.bf16 %v1925_v20, %v1922_v19  ;;  %v2504_v16 = vpop.f32.mrf.mxu1 }
 0x153   : > { %v1927_v23 = vpop.f32.mrf.mxu0 }
 0x154   : > { %2091 = vmatmul.mubr.bf16.gmra.mxu1 %v806_v22  ;;  %v1928_v27 = vadd.f32 %v1927_v23, %v1926_v21  ;;  %v2506_v17 = vpop.f32.mrf.mxu1 }
 0x155   : > { %v1929_v25 = vpop.f32.mrf.mxu0 }
 0x156   : > { %v2508_v18 = vpop.f32.mrf.mxu1 }
 0x157   : > { %v1930_v26 = vpop.f32.mrf.mxu0 }
 0x158   : > { %v1931_v28 = vadd.f32 %v1930_v26, %v1929_v25  ;;  %v2510_v19 = vpop.f32.mrf.mxu1 }
 0x159   : > { %v1932_v30 = vpop.f32.mrf.mxu0 }
 0x15a   : > { %v807_v31 = vpack.c.bf16 %v1931_v28, %v1928_v27  ;;  %v2512_v20 = vpop.f32.mrf.mxu1 }
 0x15b   : > { %v1933_v32 = vpop.f32.mrf.mxu0 }
 0x15c   : > { %2094 = vmatprep.mubr.bf16.mxu1 %v807_v31  ;;  %v1934_v36 = vadd.f32 %v1933_v32, %v1932_v30  ;;  %v2514_v21 = vpop.f32.mrf.mxu1 }
 0x15d   : > { %v1935_v34 = vpop.f32.mrf.mxu0 }
 0x15e   : > { %v2516_v22 = vpop.f32.mrf.mxu1 }
 0x15f   : > { %v1936_v35 = vpop.f32.mrf.mxu0 }
 0x160   : > { %v1937_v37 = vadd.f32 %v1936_v35, %v1935_v34  ;;  %v2518_v23 = vpop.f32.mrf.mxu1 }
 0x161   : > { %v1938_v39 = vpop.f32.mrf.mxu0 }
 0x162   : > { %v808_v40 = vpack.c.bf16 %v1937_v37, %v1934_v36  ;;  %v2520_v25 = vpop.f32.mrf.mxu1  ;;  %v2538_v36 = vld [vmem:[%s2257_s6] ss:$0 sm:$0xff] }
 0x163   : > { %v1939_v41 = vpop.f32.mrf.mxu0 }
 0x164   : > { %2095 = vmatmul.mubr.bf16.gmra.mxu1 %v808_v40  ;;  %v1940_v45 = vadd.f32 %v1939_v41, %v1938_v39  ;;  %v2522_v26 = vpop.f32.mrf.mxu1  ;;  %v1334_v39 = vstv %s1333_s22 }
 0x165   : > { %v1941_v43 = vpop.f32.mrf.mxu0  ;;  %vm2543_vm0 = vcmp.eq.s32.totalorder %v1334_v39, 1 }
 0x166   : > { %v2524_v27 = vpop.f32.mrf.mxu1 }
 0x167   : > { %v1942_v44 = vpop.f32.mrf.mxu0 }
 0x168   : > { %v1943_v46 = vadd.f32 %v1942_v44, %v1941_v43  ;;  %v2526_v28 = vpop.f32.mrf.mxu1 }
 0x169   : > { %v1944_v48 = vpop.f32.mrf.mxu0 }
 0x16a   : > { %v809_v49 = vpack.c.bf16 %v1943_v46, %v1940_v45  ;;  %v2528_v30 = vpop.f32.mrf.mxu1 }
 0x16b   : > { %v1945_v50 = vpop.f32.mrf.mxu0 }
 0x16c   : > { %2098 = vmatprep.mubr.bf16.mxu1 %v809_v49  ;;  %v1946_v54 = vadd.f32 %v1945_v50, %v1944_v48  ;;  %v2530_v31 = vpop.f32.mrf.mxu1 }
 0x16d   : > { %v1947_v52 = vpop.f32.mrf.mxu0 }
 0x16e   : > { %v2532_v32 = vpop.f32.mrf.mxu1 }
 0x16f   : > { %v1948_v53 = vpop.f32.mrf.mxu0 }
 0x170   : > { %v1949_v55 = vadd.f32 %v1948_v53, %v1947_v52  ;;  %v2535_v34 = vpop.f32.mrf.mxu1 }
 0x171   : > { %v1950_v57 = vpop.f32.mrf.mxu0 }
 0x172   : > { %v810_v58 = vpack.c.bf16 %v1949_v55, %v1946_v54 }
 0x173   : > { %v1951_v59 = vpop.f32.mrf.mxu0 }
 0x174   : > { %2099 = vmatmul.mubr.bf16.gmra.mxu1 %v810_v58  ;;  %v1952_v63 = vadd.f32 %v1951_v59, %v1950_v57 }
 0x175   : > { %v1953_v61 = vpop.f32.mrf.mxu0 }
 0x177   : > { %v1954_v62 = vpop.f32.mrf.mxu0 }
 0x178   : > { %v1955_v0 = vadd.f32 %v1954_v62, %v1953_v61 }
 0x179   : > { %v1956_v2 = vpop.f32.mrf.mxu0 }
 0x17a   : > { %v811_v3 = vpack.c.bf16 %v1955_v0, %v1952_v63 }
 0x17b   : > { %v1957_v4 = vpop.f32.mrf.mxu0 }
 0x17c   : > { %2102 = vmatprep.mubr.bf16.mxu1 %v811_v3  ;;  %v1958_v8 = vadd.f32 %v1957_v4, %v1956_v2 }
 0x17d   : > { %v1959_v6 = vpop.f32.mrf.mxu0 }
 0x17f   : > { %v1960_v7 = vpop.f32.mrf.mxu0 }
 0x180   : > { %v1961_v9 = vadd.f32 %v1960_v7, %v1959_v6 }
 0x182   : > { %v812_v11 = vpack.c.bf16 %v1961_v9, %v1958_v8 }
 0x184   : > { %2103 = vmatmul.mubr.bf16.gmra.mxu1 %v812_v11 }
 0x1d4   : > { %v2076_v35 = vpop.f32.mrf.mxu1 }
 0x1d5   : > { %v1145_v37 = vadd.f32 %v2076_v35, %v2472_v24 }
 0x1d6   : > { %v1136_v40 = vpop.f32.mrf.mxu1 }
 0x1d7   : > { %v1270_v41 = vadd.f32 %v2538_v36, %v1145_v37  ;;  %v1137_v43 = vadd.f32 %v1136_v40, %v2474_v29 }
 0x1d8   : > { %v2077_v45 = vpop.f32.mrf.mxu1 }
 0x1d9   : > { %v1303_v46 = vmax.f32 %v1270_v41, 0.0  ;;  %v1268_v48 = vadd.f32 %v2538_v36, %v1137_v43  ;;  %v1148_v49 = vadd.f32 %v2077_v45, %v2476_v33 }
 0x1da   : > { %v1139_v50 = vpop.f32.mrf.mxu1 }
 0x1db   : > { %v1338_v24 = vsel %vm2543_vm0, %v1270_v41, %v1303_v46  ;;  %v1301_v52 = vmax.f32 %v1268_v48, 0.0  ;;  %v1271_v53 = vadd.f32 %v2538_v36, %v1148_v49  ;;  %v1140_v54 = vadd.f32 %v1139_v50, %v2478_v38 }
 0x1dc   : > { %1530 = vst [vmem:[%s2776_s5 + $0x10] sm:$0xff] %v1338_v24 }
 0x1dd   : > { %v1336_v29 = vsel %vm2543_vm0, %v1268_v48, %v1301_v52  ;;  %v1304_v55 = vmax.f32 %v1271_v53, 0.0  ;;  %v1269_v57 = vadd.f32 %v2538_v36, %v1140_v54 }
 0x1de   : > { %1528 = vst [vmem:[%s2776_s5] sm:$0xff] %v1336_v29 }
 0x1df   : > { %v1339_v33 = vsel %vm2543_vm0, %v1271_v53, %v1304_v55  ;;  %v1302_v58 = vmax.f32 %v1269_v57, 0.0 }
 0x1e0   : > { %v1763_v59 = vpack.c.bf16 %v1339_v33, %v1338_v24  ;;  %1531 = vst [vmem:[%s2776_s5 + $0x18] sm:$0xff] %v1339_v33 }
 0x1e1   : > { %v1337_v38 = vsel %vm2543_vm0, %v1269_v57, %v1302_v58 }
 0x1e2   : > { %1835 = vst [vmem:[#allocation2 + $0x8] sm:$0xff] %v1763_v59   ;;  %v1758_v61 = vpack.c.bf16 %v1337_v38, %v1336_v29  ;;  %1529 = vst [vmem:[%s2776_s5 + $0x8] sm:$0xff] %v1337_v38 }
 0x1e4   : > { %1759 = vst [vmem:[#allocation2] sm:$0xff] %v1758_v61   ;;  %v2080_v62 = vpop.f32.mrf.mxu1 }
 0x1e5   : > { %v1161_v63 = vadd.f32 %v2080_v62, %v2480_v42 }
 0x1e6   : > { %v1152_v0 = vpop.f32.mrf.mxu1 }
 0x1e7   : > { %v1274_v2 = vadd.f32 %v2538_v36, %v1161_v63  ;;  %v1153_v3 = vadd.f32 %v1152_v0, %v2482_v47 }
 0x1e8   : > { %v2081_v4 = vpop.f32.mrf.mxu1 }
 0x1e9   : > { %v1307_v6 = vmax.f32 %v1274_v2, 0.0  ;;  %v1272_v7 = vadd.f32 %v2538_v36, %v1153_v3  ;;  %v1164_v8 = vadd.f32 %v2081_v4, %v2484_v51 }
 0x1ea   : > { %v1155_v9 = vpop.f32.mrf.mxu1 }
 0x1eb   : > { %v1342_v11 = vsel %vm2543_vm0, %v1274_v2, %v1307_v6  ;;  %v1305_v35 = vmax.f32 %v1272_v7, 0.0  ;;  %v1275_v37 = vadd.f32 %v2538_v36, %v1164_v8  ;;  %v1156_v42 = vadd.f32 %v1155_v9, %v2486_v56 }
 0x1ec   : > { %1534 = vst [vmem:[%s2776_s5 + $0x30] sm:$0xff] %v1342_v11 }
 0x1ed   : > { %v1340_v47 = vsel %vm2543_vm0, %v1272_v7, %v1305_v35  ;;  %v1308_v39 = vmax.f32 %v1275_v37, 0.0  ;;  %v1273_v40 = vadd.f32 %v2538_v36, %v1156_v42 }
 0x1ee   : > { %1532 = vst [vmem:[%s2776_s5 + $0x20] sm:$0xff] %v1340_v47 }
 0x1ef   : > { %v1343_v51 = vsel %vm2543_vm0, %v1275_v37, %v1308_v39  ;;  %v1306_v41 = vmax.f32 %v1273_v40, 0.0 }
 0x1f0   : > { %v1773_v43 = vpack.c.bf16 %v1343_v51, %v1342_v11  ;;  %1535 = vst [vmem:[%s2776_s5 + $0x38] sm:$0xff] %v1343_v51 }
 0x1f1   : > { %v1341_v56 = vsel %vm2543_vm0, %v1273_v40, %v1306_v41 }
 0x1f2   : > { %1837 = vst [vmem:[#allocation2 + $0x18] sm:$0xff] %v1773_v43   ;;  %v1768_v45 = vpack.c.bf16 %v1341_v56, %v1340_v47  ;;  %1533 = vst [vmem:[%s2776_s5 + $0x28] sm:$0xff] %v1341_v56 }
 0x1f4   : > { %1836 = vst [vmem:[#allocation2 + $0x10] sm:$0xff] %v1768_v45   ;;  %v2084_v46 = vpop.f32.mrf.mxu1 }
 0x1f5   : > { %v1177_v48 = vadd.f32 %v2084_v46, %v2488_v60 }
 0x1f6   : > { %v1168_v49 = vpop.f32.mrf.mxu1 }
 0x1f7   : > { %v1278_v50 = vadd.f32 %v2538_v36, %v1177_v48  ;;  %v1169_v24 = vadd.f32 %v1168_v49, %v2490_v1 }
 0x1f8   : > { %v2085_v52 = vpop.f32.mrf.mxu1 }
 0x1f9   : > { %v1311_v53 = vmax.f32 %v1278_v50, 0.0  ;;  %v1276_v54 = vadd.f32 %v2538_v36, %v1169_v24  ;;  %v1180_v29 = vadd.f32 %v2085_v52, %v2492_v5 }
 0x1fa   : > { %v1171_v55 = vpop.f32.mrf.mxu1 }
 0x1fb   : > { %v1346_v57 = vsel %vm2543_vm0, %v1278_v50, %v1311_v53  ;;  %v1309_v33 = vmax.f32 %v1276_v54, 0.0  ;;  %v1279_v58 = vadd.f32 %v2538_v36, %v1180_v29  ;;  %v1172_v60 = vadd.f32 %v1171_v55, %v2494_v10 }
 0x1fc   : > { %1538 = vst [vmem:[%s2776_s5 + $0x50] sm:$0xff] %v1346_v57 }
 0x1fd   : > { %v1344_v1 = vsel %vm2543_vm0, %v1276_v54, %v1309_v33  ;;  %v1312_v59 = vmax.f32 %v1279_v58, 0.0  ;;  %v1277_v38 = vadd.f32 %v2538_v36, %v1172_v60 }
 0x1fe   : > { %1536 = vst [vmem:[%s2776_s5 + $0x40] sm:$0xff] %v1344_v1 }
 0x1ff   : > { %v1347_v5 = vsel %vm2543_vm0, %v1279_v58, %v1312_v59  ;;  %v1310_v61 = vmax.f32 %v1277_v38, 0.0 }
 0x200   : > { %v1783_v62 = vpack.c.bf16 %v1347_v5, %v1346_v57  ;;  %1539 = vst [vmem:[%s2776_s5 + $0x58] sm:$0xff] %v1347_v5 }
 0x201   : > { %v1345_v10 = vsel %vm2543_vm0, %v1277_v38, %v1310_v61 }
 0x202   : > { %1839 = vst [vmem:[#allocation2 + $0x28] sm:$0xff] %v1783_v62   ;;  %v1778_v63 = vpack.c.bf16 %v1345_v10, %v1344_v1  ;;  %1537 = vst [vmem:[%s2776_s5 + $0x48] sm:$0xff] %v1345_v10 }
 0x204   : > { %1838 = vst [vmem:[#allocation2 + $0x20] sm:$0xff] %v1778_v63   ;;  %v2088_v0 = vpop.f32.mrf.mxu1 }
 0x205   : > { %v1193_v2 = vadd.f32 %v2088_v0, %v2496_v12 }
 0x206   : > { %v1184_v3 = vpop.f32.mrf.mxu1 }
 0x207   : > { %v1282_v4 = vadd.f32 %v2538_v36, %v1193_v2  ;;  %v1185_v6 = vadd.f32 %v1184_v3, %v2498_v13 }
 0x208   : > { %v2089_v7 = vpop.f32.mrf.mxu1 }
 0x209   : > { %v1315_v8 = vmax.f32 %v1282_v4, 0.0  ;;  %v1280_v9 = vadd.f32 %v2538_v36, %v1185_v6  ;;  %v1196_v11 = vadd.f32 %v2089_v7, %v2500_v14 }
 0x20a   : > { %v1187_v35 = vpop.f32.mrf.mxu1 }
 0x20b   : > { %v1350_v37 = vsel %vm2543_vm0, %v1282_v4, %v1315_v8  ;;  %v1313_v42 = vmax.f32 %v1280_v9, 0.0  ;;  %v1283_v47 = vadd.f32 %v2538_v36, %v1196_v11  ;;  %v1188_v12 = vadd.f32 %v1187_v35, %v2502_v15 }
 0x20c   : > { %1542 = vst [vmem:[%s2776_s5 + $0x70] sm:$0xff] %v1350_v37 }
 0x20d   : > { %v1348_v13 = vsel %vm2543_vm0, %v1280_v9, %v1313_v42  ;;  %v1316_v39 = vmax.f32 %v1283_v47, 0.0  ;;  %v1281_v40 = vadd.f32 %v2538_v36, %v1188_v12 }
 0x20e   : > { %1540 = vst [vmem:[%s2776_s5 + $0x60] sm:$0xff] %v1348_v13 }
 0x20f   : > { %v1351_v14 = vsel %vm2543_vm0, %v1283_v47, %v1316_v39  ;;  %v1314_v51 = vmax.f32 %v1281_v40, 0.0 }
 0x210   : > { %v1793_v41 = vpack.c.bf16 %v1351_v14, %v1350_v37  ;;  %1543 = vst [vmem:[%s2776_s5 + $0x78] sm:$0xff] %v1351_v14 }
 0x211   : > { %v1349_v15 = vsel %vm2543_vm0, %v1281_v40, %v1314_v51 }
 0x212   : > { %1841 = vst [vmem:[#allocation2 + $0x38] sm:$0xff] %v1793_v41   ;;  %v1788_v43 = vpack.c.bf16 %v1349_v15, %v1348_v13  ;;  %1541 = vst [vmem:[%s2776_s5 + $0x68] sm:$0xff] %v1349_v15 }
 0x214   : > { %1840 = vst [vmem:[#allocation2 + $0x30] sm:$0xff] %v1788_v43   ;;  %v2092_v56 = vpop.f32.mrf.mxu1 }
 0x215   : > { %v1209_v45 = vadd.f32 %v2092_v56, %v2504_v16 }
 0x216   : > { %v1200_v46 = vpop.f32.mrf.mxu1 }
 0x217   : > { %v1286_v48 = vadd.f32 %v2538_v36, %v1209_v45  ;;  %v1201_v49 = vadd.f32 %v1200_v46, %v2506_v17 }
 0x218   : > { %v2093_v50 = vpop.f32.mrf.mxu1 }
 0x219   : > { %v1319_v24 = vmax.f32 %v1286_v48, 0.0  ;;  %v1284_v52 = vadd.f32 %v2538_v36, %v1201_v49  ;;  %v1212_v53 = vadd.f32 %v2093_v50, %v2508_v18 }
 0x21a   : > { %v1203_v54 = vpop.f32.mrf.mxu1 }
 0x21b   : > { %v1354_v29 = vsel %vm2543_vm0, %v1286_v48, %v1319_v24  ;;  %v1317_v55 = vmax.f32 %v1284_v52, 0.0  ;;  %v1287_v57 = vadd.f32 %v2538_v36, %v1212_v53  ;;  %v1204_v16 = vadd.f32 %v1203_v54, %v2510_v19 }
 0x21c   : > { %1546 = vst [vmem:[%s2776_s5 + $0x90] sm:$0xff] %v1354_v29 }
 0x21d   : > { %v1352_v17 = vsel %vm2543_vm0, %v1284_v52, %v1317_v55  ;;  %v1320_v33 = vmax.f32 %v1287_v57, 0.0  ;;  %v1285_v58 = vadd.f32 %v2538_v36, %v1204_v16 }
 0x21e   : > { %1544 = vst [vmem:[%s2776_s5 + $0x80] sm:$0xff] %v1352_v17 }
 0x21f   : > { %v1355_v18 = vsel %vm2543_vm0, %v1287_v57, %v1320_v33  ;;  %v1318_v60 = vmax.f32 %v1285_v58, 0.0 }
 0x220   : > { %v1803_v1 = vpack.c.bf16 %v1355_v18, %v1354_v29  ;;  %1547 = vst [vmem:[%s2776_s5 + $0x98] sm:$0xff] %v1355_v18 }
 0x221   : > { %v1353_v19 = vsel %vm2543_vm0, %v1285_v58, %v1318_v60 }
 0x222   : > { %1843 = vst [vmem:[#allocation2 + $0x48] sm:$0xff] %v1803_v1   ;;  %v1798_v59 = vpack.c.bf16 %v1353_v19, %v1352_v17  ;;  %1545 = vst [vmem:[%s2776_s5 + $0x88] sm:$0xff] %v1353_v19 }
 0x224   : > { %1842 = vst [vmem:[#allocation2 + $0x40] sm:$0xff] %v1798_v59   ;;  %v2096_v38 = vpop.f32.mrf.mxu1 }
 0x225   : > { %v1225_v5 = vadd.f32 %v2096_v38, %v2512_v20 }
 0x226   : > { %v1216_v61 = vpop.f32.mrf.mxu1 }
 0x227   : > { %v1290_v62 = vadd.f32 %v2538_v36, %v1225_v5  ;;  %v1217_v10 = vadd.f32 %v1216_v61, %v2514_v21 }
 0x228   : > { %v2097_v63 = vpop.f32.mrf.mxu1 }
 0x229   : > { %v1323_v0 = vmax.f32 %v1290_v62, 0.0  ;;  %v1288_v2 = vadd.f32 %v2538_v36, %v1217_v10  ;;  %v1228_v3 = vadd.f32 %v2097_v63, %v2516_v22 }
 0x22a   : > { %v1219_v4 = vpop.f32.mrf.mxu1 }
 0x22b   : > { %v1358_v6 = vsel %vm2543_vm0, %v1290_v62, %v1323_v0  ;;  %v1321_v7 = vmax.f32 %v1288_v2, 0.0  ;;  %v1291_v8 = vadd.f32 %v2538_v36, %v1228_v3  ;;  %v1220_v20 = vadd.f32 %v1219_v4, %v2518_v23 }
 0x22c   : > { %1550 = vst [vmem:[%s2776_s5 + $0xb0] sm:$0xff] %v1358_v6 }
 0x22d   : > { %v1356_v21 = vsel %vm2543_vm0, %v1288_v2, %v1321_v7  ;;  %v1324_v9 = vmax.f32 %v1291_v8, 0.0  ;;  %v1289_v11 = vadd.f32 %v2538_v36, %v1220_v20 }
 0x22e   : > { %1548 = vst [vmem:[%s2776_s5 + $0xa0] sm:$0xff] %v1356_v21 }
 0x22f   : > { %v1359_v22 = vsel %vm2543_vm0, %v1291_v8, %v1324_v9  ;;  %v1322_v35 = vmax.f32 %v1289_v11, 0.0 }
 0x230   : > { %v1813_v37 = vpack.c.bf16 %v1359_v22, %v1358_v6  ;;  %1551 = vst [vmem:[%s2776_s5 + $0xb8] sm:$0xff] %v1359_v22 }
 0x231   : > { %v1357_v23 = vsel %vm2543_vm0, %v1289_v11, %v1322_v35 }
 0x232   : > { %1845 = vst [vmem:[#allocation2 + $0x58] sm:$0xff] %v1813_v37   ;;  %v1808_v42 = vpack.c.bf16 %v1357_v23, %v1356_v21  ;;  %1549 = vst [vmem:[%s2776_s5 + $0xa8] sm:$0xff] %v1357_v23 }
 0x234   : > { %1844 = vst [vmem:[#allocation2 + $0x50] sm:$0xff] %v1808_v42   ;;  %v2100_v47 = vpop.f32.mrf.mxu1 }
 0x235   : > { %v1241_v12 = vadd.f32 %v2100_v47, %v2520_v25 }
 0x236   : > { %v1232_v13 = vpop.f32.mrf.mxu1 }
 0x237   : > { %v1294_v39 = vadd.f32 %v2538_v36, %v1241_v12  ;;  %v1233_v40 = vadd.f32 %v1232_v13, %v2522_v26 }
 0x238   : > { %v2101_v14 = vpop.f32.mrf.mxu1 }
 0x239   : > { %v1327_v51 = vmax.f32 %v1294_v39, 0.0  ;;  %v1292_v41 = vadd.f32 %v2538_v36, %v1233_v40  ;;  %v1244_v15 = vadd.f32 %v2101_v14, %v2524_v27 }
 0x23a   : > { %v1235_v43 = vpop.f32.mrf.mxu1 }
 0x23b   : > { %v1362_v56 = vsel %vm2543_vm0, %v1294_v39, %v1327_v51  ;;  %v1325_v45 = vmax.f32 %v1292_v41, 0.0  ;;  %v1295_v46 = vadd.f32 %v2538_v36, %v1244_v15  ;;  %v1236_v25 = vadd.f32 %v1235_v43, %v2526_v28 }
 0x23c   : > { %1554 = vst [vmem:[%s2776_s5 + $0xd0] sm:$0xff] %v1362_v56 }
 0x23d   : > { %v1360_v26 = vsel %vm2543_vm0, %v1292_v41, %v1325_v45  ;;  %v1328_v48 = vmax.f32 %v1295_v46, 0.0  ;;  %v1293_v49 = vadd.f32 %v2538_v36, %v1236_v25 }
 0x23e   : > { %1552 = vst [vmem:[%s2776_s5 + $0xc0] sm:$0xff] %v1360_v26 }
 0x23f   : > { %v1363_v27 = vsel %vm2543_vm0, %v1295_v46, %v1328_v48  ;;  %v1326_v50 = vmax.f32 %v1293_v49, 0.0 }
 0x240   : > { %v1823_v24 = vpack.c.bf16 %v1363_v27, %v1362_v56  ;;  %1555 = vst [vmem:[%s2776_s5 + $0xd8] sm:$0xff] %v1363_v27 }
 0x241   : > { %v1361_v28 = vsel %vm2543_vm0, %v1293_v49, %v1326_v50 }
 0x242   : > { %1847 = vst [vmem:[#allocation2 + $0x68] sm:$0xff] %v1823_v24   ;;  %v1818_v52 = vpack.c.bf16 %v1361_v28, %v1360_v26  ;;  %1553 = vst [vmem:[%s2776_s5 + $0xc8] sm:$0xff] %v1361_v28 }
 0x244   : > { %1846 = vst [vmem:[#allocation2 + $0x60] sm:$0xff] %v1818_v52   ;;  %v2104_v53 = vpop.f32.mrf.mxu1 }
 0x245   : > { %v1257_v54 = vadd.f32 %v2104_v53, %v2528_v30 }
 0x246   : > { %v1248_v29 = vpop.f32.mrf.mxu1 }
 0x247   : > { %v1298_v55 = vadd.f32 %v2538_v36, %v1257_v54  ;;  %v1249_v57 = vadd.f32 %v1248_v29, %v2530_v31 }
 0x248   : > { %v2105_v16 = vpop.f32.mrf.mxu1 }
 0x249   : > { %v1331_v17 = vmax.f32 %v1298_v55, 0.0  ;;  %v1296_v33 = vadd.f32 %v2538_v36, %v1249_v57  ;;  %v1260_v58 = vadd.f32 %v2105_v16, %v2532_v32 }
 0x24a   : > { %v1251_v18 = vpop.f32.mrf.mxu1 }
 0x24b   : > { %v1366_v60 = vsel %vm2543_vm0, %v1298_v55, %v1331_v17  ;;  %v1329_v1 = vmax.f32 %v1296_v33, 0.0  ;;  %v1299_v19 = vadd.f32 %v2538_v36, %v1260_v58  ;;  %v1252_v30 = vadd.f32 %v1251_v18, %v2535_v34 }
 0x24c   : > { %1558 = vst [vmem:[%s2776_s5 + $0xf0] sm:$0xff] %v1366_v60 }
 0x24d   : > { %v1364_v31 = vsel %vm2543_vm0, %v1296_v33, %v1329_v1  ;;  %v1332_v59 = vmax.f32 %v1299_v19, 0.0  ;;  %v1297_v38 = vadd.f32 %v2538_v36, %v1252_v30 }
 0x24e   : > { %1556 = vst [vmem:[%s2776_s5 + $0xe0] sm:$0xff] %v1364_v31 }
 0x24f   : > { %v1367_v32 = vsel %vm2543_vm0, %v1299_v19, %v1332_v59  ;;  %v1330_v5 = vmax.f32 %v1297_v38, 0.0 }
 0x250   : > { %v1833_v61 = vpack.c.bf16 %v1367_v32, %v1366_v60  ;;  %1559 = vst [vmem:[%s2776_s5 + $0xf8] sm:$0xff] %v1367_v32 }
 0x251   : > { %v1365_v34 = vsel %vm2543_vm0, %v1297_v38, %v1330_v5 }
 0x252   : > { %1849 = vst [vmem:[#allocation2 + $0x78] sm:$0xff] %v1833_v61   ;;  %v1828_v62 = vpack.c.bf16 %v1365_v34, %v1364_v31  ;;  %1557 = vst [vmem:[%s2776_s5 + $0xe8] sm:$0xff] %v1365_v34 }
 0x254   : > { %1848 = vst [vmem:[#allocation2 + $0x70] sm:$0xff] %v1828_v62  }
 0x255 PF: > { %s15_s18 = sadd.s32 1, %s2200_s18  }
 0x256   : > { %p12_p6 = scmp.ge.s32.totalorder %s15_s18, 5  }
 0x258   :  { %14 = sbr.rel (!%p12_p6) target bundleno = 1 (0x1), region = 76 }

</bundles_post_ra>
